<compile_context>
chip_gen: v7x
topology: tpu7x:2x2x1
jax: 0.10.0
libtpu: 0.0.40
codegen_flags: <defaults>
</compile_context>

<pallas_src>
import functools

import jax
import jax.numpy as jnp
from jax import lax
from jax.experimental import pallas as pl
from jax.experimental.pallas import tpu as pltpu


def _mean_filter_kernel(x_ref, top_ref, bot_ref, o_ref, *,
                        h_total, hb, sub, mask_rows):
    """Zero-padded 3x3 mean (AvgPool2d k=3, s=1, p=1, count_include_pad=True).

    x_ref / o_ref : (1, cb, Hb, W) NCHW block — W on lanes, H rows on sublanes.
    top_ref/bot_ref: (1, cb, sub, W) halo tiles; only their boundary row
    (row just above / just below this H block) is used.
    """
    h = pl.program_id(2)
    nh = pl.num_programs(2)

    x = x_ref[0].astype(jnp.float32)                    # (cb, Hb, W), f32 acc
    cb, Hb, W = x.shape

    # Zero rows that fall past the true image height (partial last H block).
    if mask_rows:
        r_glob = h * hb + lax.broadcasted_iota(jnp.int32, (1, Hb, 1), 1)
        x = jnp.where(r_glob < h_total, x, 0.0)

    # Halo rows (zeroed when this block touches the top / bottom image edge).
    top_full = top_ref[...]                             # (1, cb, sub, W)
    bot_full = bot_ref[...]
    top_row = jnp.where(h > 0,
                        top_full[0, :, sub - 1:sub, :].astype(jnp.float32),
                        0.0)                            # row h*hb - 1
    bot_row = jnp.where(h < nh - 1,
                        bot_full[0, :, 0:1, :].astype(jnp.float32),
                        0.0)                            # row (h+1)*hb

    # --- vertical 3-tap (rows i-1, i, i+1): sublane rolls + halo rows.
    r_idx = lax.broadcasted_iota(jnp.int32, (1, Hb, 1), 1)
    down = jnp.where(r_idx < Hb - 1,
                     pltpu.roll(x, shift=Hb - 1, axis=1), bot_row)   # row i+1
    up = jnp.where(r_idx > 0,
                   pltpu.roll(x, shift=1, axis=1), top_row)          # row i-1
    col_sum = x + down + up

    # --- horizontal 3-tap (cols j-1, j, j+1): lane rolls + edge masks.
    w_idx = lax.broadcasted_iota(jnp.int32, (1, 1, W), 2)
    right = jnp.where(w_idx < W - 1,
                      pltpu.roll(col_sum, shift=W - 1, axis=2), 0.0)  # col j+1
    left = jnp.where(w_idx > 0,
                     pltpu.roll(col_sum, shift=1, axis=2), 0.0)       # col j-1
    total = col_sum + right + left

    # count_include_pad=True (PyTorch default): divide by 9 everywhere.
    o_ref[0] = (total * jnp.float32(1.0 / 9.0)).astype(o_ref.dtype)


def _vmem_plan():
    """(block f32 budget, vmem_limit_bytes) per TPU generation."""
    vmem_cap = None
    try:
        info = pltpu.get_tpu_info()
        vmem_cap = getattr(info, "vmem_capacity_bytes", None)
    except Exception:
        vmem_cap = None
    if vmem_cap is None:
        vmem_cap = 64 * 1024 * 1024            # assume smallest (v7x-class)
    if vmem_cap <= 64 * 1024 * 1024:           # v7x: 64 MiB / TensorCore
        return 2 * 1024 * 1024, 40 * 1024 * 1024
    # v5e / v6e: 128 MiB physical VMEM -> big DMA tiles, high scoped limit.
    return 8 * 1024 * 1024, 96 * 1024 * 1024


def _block_plan(C, H, W, dtype, budget_f32_bytes):
    """Pick (cb, hb, sub): channel block, H block (full H or mult of `sub`)."""
    itemsize = jnp.dtype(dtype).itemsize
    sub = max(8, 32 // itemsize)               # f32: 8 rows, bf16: 16, int8: 32
    row_f32 = W * 4                            # size against f32 intermediates
    plane_f32 = H * row_f32
    if C * plane_f32 <= budget_f32_bytes:
        cb, hb = C, H                          # whole image slab per step
    elif plane_f32 <= budget_f32_bytes:
        cb = min(C, max(1, budget_f32_bytes // plane_f32))
        hb = H                                 # full H, a few channels
    else:                                      # plane too big -> tile H
        cb = 1
        hb = max(sub, (budget_f32_bytes // row_f32) // sub * sub)
        hb = min(hb, H)
    return cb, hb, sub


def mean_filter(x, *, block_budget_bytes=None, vmem_limit_bytes=None):
    """AvgPool2d(kernel_size=3, stride=1, padding=1) on NCHW input (NCHW out)."""
    N, C, H, W = x.shape

    auto_budget, auto_limit = _vmem_plan()
    budget = auto_budget if block_budget_bytes is None else block_budget_bytes
    vmem_limit = auto_limit if vmem_limit_bytes is None else vmem_limit_bytes

    cb, hb, sub = _block_plan(C, H, W, x.dtype, budget)
    nc = pl.cdiv(C, cb)
    nh = pl.cdiv(H, hb)
    n_row_tiles = pl.cdiv(H, sub)              # number of `sub`-row halo tiles
    hb_tiles = hb // sub                       # exact whenever nh > 1

    def main_map(n, c, h):
        return (n, c, h, 0)

    def top_map(n, c, h):
        # `sub`-row tile containing row h*hb - 1 (clamped; unused when h == 0).
        return (n, c, jnp.maximum(h * hb_tiles - 1, 0), 0)

    def bot_map(n, c, h):
        # `sub`-row tile containing row (h+1)*hb (clamped; unused at the edge).
        return (n, c, jnp.minimum((h + 1) * hb_tiles, n_row_tiles - 1), 0)

    kernel = functools.partial(
        _mean_filter_kernel,
        h_total=H, hb=hb, sub=sub, mask_rows=(H % hb != 0))

    return pl.pallas_call(
        kernel,
        out_shape=jax.ShapeDtypeStruct((N, C, H, W), x.dtype),
        grid_spec=pl.GridSpec(
            grid=(N, nc, nh),                  # all independent -> parallel
            in_specs=[
                pl.BlockSpec((1, cb, hb, W), main_map),
                pl.BlockSpec((1, cb, sub, W), top_map),
                pl.BlockSpec((1, cb, sub, W), bot_map),
            ],
            out_specs=pl.BlockSpec((1, cb, hb, W), main_map),
        ),
        compiler_params=pltpu.CompilerParams(
            dimension_semantics=("parallel", "parallel", "parallel"),
            vmem_limit_bytes=vmem_limit,
        ),
    )(x, x, x)


def _reference(x):
    # Pure-JAX reference: zero-padded 3x3 window sum / 9 (count_include_pad=True).
    s = lax.reduce_window(
        x.astype(jnp.float32), 0.0, lax.add,
        window_dimensions=(1, 1, 3, 3),
        window_strides=(1, 1, 1, 1),
        padding=((0, 0), (0, 0), (1, 1), (1, 1)),
    )
    return (s / 9.0).astype(x.dtype)


if __name__ == "__main__":
    key = jax.random.PRNGKey(0)

    # Main check: one (C, H, W) slab per grid step (no H tiling needed).
    N, C, H, W = 2, 4, 16, 16
    x = jax.random.normal(key, (N, C, H, W), dtype=jnp.float32)
    out = jax.block_until_ready(mean_filter(x))
    assert out.shape == (N, C, H, W)
    assert jnp.allclose(out, _reference(x), atol=1e-5, rtol=1e-5)

    # Tiny budget override -> forces channel blocking + H tiling with halos.
    out_tiled = jax.block_until_ready(mean_filter(x, block_budget_bytes=512))
    assert jnp.allclose(out_tiled, _reference(x), atol=1e-5, rtol=1e-5)

    # Odd spatial sizes -> partial last H block (row masking) + odd lane width.
    key2 = jax.random.fold_in(key, 1)
    x2 = jax.random.normal(key2, (1, 3, 13, 20), dtype=jnp.float32)
    out2 = jax.block_until_ready(mean_filter(x2, block_budget_bytes=512))
    assert jnp.allclose(out2, _reference(x2), atol=1e-5, rtol=1e-5)

    print("KERNEL_OK")
</pallas_src>

<mosaic_0001>
module attributes {stable_mosaic.version = 11 : i64} {
  func.func @_mean_filter_kernel(%arg0: i32, %arg1: i32, %arg2: i32, %arg3: memref<1x4x16x16xf32, #tpu.memory_space<vmem>>, %arg4: memref<1x4x8x16xf32, #tpu.memory_space<vmem>>, %arg5: memref<1x4x8x16xf32, #tpu.memory_space<vmem>>, %arg6: memref<1x4x16x16xf32, #tpu.memory_space<vmem>>) attributes {dimension_semantics = [#tpu.dimension_semantics<parallel>, #tpu.dimension_semantics<parallel>, #tpu.dimension_semantics<parallel>], iteration_bounds = array<i64: 2, 1, 1>, scalar_prefetch = 0 : i64, scratch_operands = 0 : i64, tpu.core_type = #tpu.core_type<tc>, window_params = [{transform_indices = @transform_0, window_bounds = array<i64: 1, 4, 16, 16>}, {transform_indices = @transform_1, window_bounds = array<i64: 1, 4, 8, 16>}, {transform_indices = @transform_2, window_bounds = array<i64: 1, 4, 8, 16>}, {transform_indices = @transform_3, window_bounds = array<i64: 1, 4, 16, 16>}]} {
    %c0 = arith.constant 0 : index
    %c0_0 = arith.constant 0 : index
    %c0_1 = arith.constant 0 : index
    %c0_2 = arith.constant 0 : index
    %0 = vector.load %arg3[%c0, %c0_0, %c0_1, %c0_2] : memref<1x4x16x16xf32, #tpu.memory_space<vmem>>, vector<1x4x16x16xf32>
    %1 = vector.shape_cast %0 : vector<1x4x16x16xf32> to vector<4x16x16xf32>
    %c0_3 = arith.constant 0 : index
    %c0_4 = arith.constant 0 : index
    %c0_5 = arith.constant 0 : index
    %c0_6 = arith.constant 0 : index
    %2 = vector.load %arg4[%c0_3, %c0_4, %c0_5, %c0_6] : memref<1x4x8x16xf32, #tpu.memory_space<vmem>>, vector<1x4x8x16xf32>
    %c0_7 = arith.constant 0 : index
    %c0_8 = arith.constant 0 : index
    %c0_9 = arith.constant 0 : index
    %c0_10 = arith.constant 0 : index
    %3 = vector.load %arg5[%c0_7, %c0_8, %c0_9, %c0_10] : memref<1x4x8x16xf32, #tpu.memory_space<vmem>>, vector<1x4x8x16xf32>
    %c0_i32 = arith.constant 0 : i32
    %4 = arith.cmpi sgt, %arg2, %c0_i32 : i32
    %5 = vector.extract_strided_slice %2 {offsets = [0, 0, 7, 0], sizes = [1, 4, 1, 16], strides = [1, 1, 1, 1]} : vector<1x4x8x16xf32> to vector<1x4x1x16xf32>
    %6 = vector.shape_cast %5 : vector<1x4x1x16xf32> to vector<4x1x16xf32>
    %cst = arith.constant 0.000000e+00 : f32
    %7 = vector.broadcast %cst : f32 to vector<4x1x16xf32>
    %8 = arith.select %4, %6, %7 : vector<4x1x16xf32>
    %c0_i32_11 = arith.constant 0 : i32
    %9 = arith.cmpi slt, %arg2, %c0_i32_11 : i32
    %10 = vector.extract_strided_slice %3 {offsets = [0, 0, 0, 0], sizes = [1, 4, 1, 16], strides = [1, 1, 1, 1]} : vector<1x4x8x16xf32> to vector<1x4x1x16xf32>
    %11 = vector.shape_cast %10 : vector<1x4x1x16xf32> to vector<4x1x16xf32>
    %cst_12 = arith.constant 0.000000e+00 : f32
    %12 = vector.broadcast %cst_12 : f32 to vector<4x1x16xf32>
    %13 = arith.select %9, %11, %12 : vector<4x1x16xf32>
    %14 = tpu.iota {dimensions = array<i32: 1>} : vector<1x16x1xi32>
    %c15_i32 = arith.constant 15 : i32
    %15 = vector.broadcast %c15_i32 : i32 to vector<1x16x1xi32>
    %16 = arith.cmpi slt, %14, %15 : vector<1x16x1xi32>
    %c15_i32_13 = arith.constant 15 : i32
    %17 = tpu.dynamic_rotate %1 by %c15_i32_13 dim 1 : vector<4x16x16xf32>, i32 -> vector<4x16x16xf32>
    %18 = vector.shape_cast %16 : vector<1x16x1xi1> to vector<1x16x1xi1>
    %19 = vector.broadcast %18 : vector<1x16x1xi1> to vector<4x16x16xi1>
    %20 = vector.shape_cast %13 : vector<4x1x16xf32> to vector<4x1x16xf32>
    %21 = vector.broadcast %20 : vector<4x1x16xf32> to vector<4x16x16xf32>
    %22 = arith.select %19, %17, %21 : vector<4x16x16xi1>, vector<4x16x16xf32>
    %c0_i32_14 = arith.constant 0 : i32
    %23 = vector.broadcast %c0_i32_14 : i32 to vector<1x16x1xi32>
    %24 = arith.cmpi sgt, %14, %23 : vector<1x16x1xi32>
    %c1_i32 = arith.constant 1 : i32
    %25 = tpu.dynamic_rotate %1 by %c1_i32 dim 1 : vector<4x16x16xf32>, i32 -> vector<4x16x16xf32>
    %26 = vector.shape_cast %24 : vector<1x16x1xi1> to vector<1x16x1xi1>
    %27 = vector.broadcast %26 : vector<1x16x1xi1> to vector<4x16x16xi1>
    %28 = vector.shape_cast %8 : vector<4x1x16xf32> to vector<4x1x16xf32>
    %29 = vector.broadcast %28 : vector<4x1x16xf32> to vector<4x16x16xf32>
    %30 = arith.select %27, %25, %29 : vector<4x16x16xi1>, vector<4x16x16xf32>
    %31 = arith.addf %1, %22 : vector<4x16x16xf32>
    %32 = arith.addf %31, %30 : vector<4x16x16xf32>
    %33 = tpu.iota {dimensions = array<i32: 2>} : vector<1x1x16xi32>
    %c15_i32_15 = arith.constant 15 : i32
    %34 = vector.broadcast %c15_i32_15 : i32 to vector<1x1x16xi32>
    %35 = arith.cmpi slt, %33, %34 : vector<1x1x16xi32>
    %c15_i32_16 = arith.constant 15 : i32
    %36 = tpu.dynamic_rotate %32 by %c15_i32_16 dim 2 : vector<4x16x16xf32>, i32 -> vector<4x16x16xf32>
    %cst_17 = arith.constant 0.000000e+00 : f32
    %37 = vector.shape_cast %35 : vector<1x1x16xi1> to vector<1x1x16xi1>
    %38 = vector.broadcast %37 : vector<1x1x16xi1> to vector<4x16x16xi1>
    %39 = vector.broadcast %cst_17 : f32 to vector<4x16x16xf32>
    %40 = arith.select %38, %36, %39 : vector<4x16x16xi1>, vector<4x16x16xf32>
    %c0_i32_18 = arith.constant 0 : i32
    %41 = vector.broadcast %c0_i32_18 : i32 to vector<1x1x16xi32>
    %42 = arith.cmpi sgt, %33, %41 : vector<1x1x16xi32>
    %c1_i32_19 = arith.constant 1 : i32
    %43 = tpu.dynamic_rotate %32 by %c1_i32_19 dim 2 : vector<4x16x16xf32>, i32 -> vector<4x16x16xf32>
    %cst_20 = arith.constant 0.000000e+00 : f32
    %44 = vector.shape_cast %42 : vector<1x1x16xi1> to vector<1x1x16xi1>
    %45 = vector.broadcast %44 : vector<1x1x16xi1> to vector<4x16x16xi1>
    %46 = vector.broadcast %cst_20 : f32 to vector<4x16x16xf32>
    %47 = arith.select %45, %43, %46 : vector<4x16x16xi1>, vector<4x16x16xf32>
    %48 = arith.addf %32, %40 : vector<4x16x16xf32>
    %49 = arith.addf %48, %47 : vector<4x16x16xf32>
    %cst_21 = arith.constant 0.111111112 : f32
    %50 = vector.broadcast %cst_21 : f32 to vector<4x16x16xf32>
    %51 = arith.mulf %49, %50 : vector<4x16x16xf32>
    %c0_22 = arith.constant 0 : index
    %c0_23 = arith.constant 0 : index
    %c0_24 = arith.constant 0 : index
    %c0_25 = arith.constant 0 : index
    %52 = vector.load %arg6[%c0_22, %c0_23, %c0_24, %c0_25] : memref<1x4x16x16xf32, #tpu.memory_space<vmem>>, vector<1x4x16x16xf32>
    %53 = vector.shape_cast %52 : vector<1x4x16x16xf32> to vector<4x16x16xf32>
    %54 = vector.shape_cast %51 : vector<4x16x16xf32> to vector<1x4x16x16xf32>
    tpu.vector_store %arg6[%c0_22, %c0_23, %c0_24, %c0_25], %54 {strides = array<i32>} : memref<1x4x16x16xf32, #tpu.memory_space<vmem>>, vector<1x4x16x16xf32>,
    return
  }
  func.func @transform_0(%arg0: i32, %arg1: i32, %arg2: i32) -> (i32, i32, i32, i32) {
    %c0_i32 = arith.constant 0 : i32
    %c0_i32_0 = arith.constant 0 : i32
    return %arg0, %arg1, %arg2, %c0_i32 : i32, i32, i32, i32
  }
  func.func @transform_1(%arg0: i32, %arg1: i32, %arg2: i32) -> (i32, i32, i32, i32) {
    %c2_i32 = arith.constant 2 : i32
    %0 = arith.muli %arg2, %c2_i32 : i32
    %c1_i32 = arith.constant 1 : i32
    %1 = arith.subi %0, %c1_i32 : i32
    %c0_i32 = arith.constant 0 : i32
    %2 = arith.maxsi %1, %c0_i32 : i32
    %c0_i32_0 = arith.constant 0 : i32
    %c0_i32_1 = arith.constant 0 : i32
    return %arg0, %arg1, %2, %c0_i32_0 : i32, i32, i32, i32
  }
  func.func @transform_2(%arg0: i32, %arg1: i32, %arg2: i32) -> (i32, i32, i32, i32) {
    %c1_i32 = arith.constant 1 : i32
    %0 = arith.addi %arg2, %c1_i32 : i32
    %c2_i32 = arith.constant 2 : i32
    %1 = arith.muli %0, %c2_i32 : i32
    %c1_i32_0 = arith.constant 1 : i32
    %2 = arith.minsi %1, %c1_i32_0 : i32
    %c0_i32 = arith.constant 0 : i32
    %c0_i32_1 = arith.constant 0 : i32
    return %arg0, %arg1, %2, %c0_i32 : i32, i32, i32, i32
  }
  func.func @transform_3(%arg0: i32, %arg1: i32, %arg2: i32) -> (i32, i32, i32, i32) {
    %c0_i32 = arith.constant 0 : i32
    %c0_i32_0 = arith.constant 0 : i32
    return %arg0, %arg1, %arg2, %c0_i32 : i32, i32, i32, i32
  }
}

</mosaic_0001>

<bundles_post_ra>
// kernel: tpu_custom_call.1
= control target key start
LH: loop header
LB: loop body
LE: loop exit
PB: predicated region body
PF: predicated region fallthrough
CT: control target
= control target key end

     0   :  { %s1633_s0 = inlined_call_operand.hbm [shape: f32[2,4,16,16], index: 0, kind: input, shape index: {}]   ;;  %s1634_s1 = inlined_call_operand.hbm [shape: f32[2,4,16,16], index: 1, kind: input, shape index: {}]   ;;  %s1635_s2 = inlined_call_operand.hbm [shape: f32[2,4,16,16], index: 2, kind: input, shape index: {}]   ;;  %s1636_s3 = inlined_call_operand.hbm [shape: f32[2,4,16,16], index: 3, kind: output, shape index: {}]  }
   0x1   :  { %1647 = sst [smem:[#allocation16_spill]] %s1634_s1 }
   0x2   :  { %8 = vsyncpa [#allocation3], 0 }
   0x3   :  { %10 = vsyncpa [#allocation3 + $0x1], 0 }
   0x4   :  { %11 = vsyncpa [#allocation6], 0 }
   0x5   :  { %13 = vsyncpa [#allocation6 + $0x1], 0 }
   0x6   :  { %14 = vsyncpa [#allocation4], 0 }
   0x7   :  { %16 = vsyncpa [#allocation4 + $0x1], 0  ;;  %s1144_s12 = smov 0   ;;  %s1146_s13 = smov 0  }
   0x8   :  { %s1148_s14 = smov 0   ;;  %s1150_s15 = smov 0  }
   0x9   :  { %s1152_s16 = smov 0   ;;  %s1154_s17 = smov 0  }
   0xa LB: > { %1648 = sst [smem:[#allocation12_spill]] %s1097_s14  ;;  %s1175_s18 = sadd.s32 4294967295, %s1109_s17   ;;  %s1109_s17 = sphi %s1154_s17, %s22_s17   ;;  %s1105_s16 = sphi %s1152_s16, %s1671_s16   ;;  %s1101_s15 = sphi %s1150_s15, %s1670_s15   ;;  %s1097_s14 = sphi %s1148_s14, %s1669_s14   ;;  %s1093_s13 = sphi %s1146_s13, %s1673_s13   ;;  %s1089_s12 = sphi %s1144_s12, %s1672_s12  }
   0xb   : > { %1649 = sst [smem:[#allocation13_spill]] %s1105_s16  ;;  %s824_s19 = sadd.s32 4294967294, %s1109_s17  }
   0xc   : > { %s41_s20 = sadd.s32 1, %s1105_s16  ;;  %s52_s21 = sadd.s32 1, %s1097_s14 }
   0xd   : > { %p43_p0 = scmp.ge.s32.totalorder %s41_s20, 2  ;;  %p59_p1 = scmp.ne.s32.totalorder %s1097_s14, %s1093_s13 }
   0xe   : > { %p60_p2 = scmp.eq.s32.totalorder %s1109_s17, 0  ;;  %p65_p3 = scmp.ne.s32.totalorder %s1093_s13, %s1089_s12 }
   0xf   : > { %s1675_s20 = smov (%p43_p0, %s41_s20), 0  ;;  %p66_p5 = scmp.eq.s32.totalorder %s1175_s18, 0 }
  0x10   : > { %1650 = sst [smem:[#allocation14_spill]] %s1675_s20  ;;  %p1187_p4 = por %p60_p2, %p59_p1 }
  0x11   : > { %s45_s23 = ssub.s32 %s1105_s16, %s1675_s20  ;;  %p169_p6 = scmp.eq.s32.totalorder %s1175_s18, 1 }
  0x12   : > { %p50_p7 = scmp.eq.s32.totalorder %s45_s23, 0  ;;  %p1195_p8 = por %p66_p5, %p65_p3 }
  0x13   : > { %p1199_p9 = por %p169_p6, %p59_p1  ;;  %p175_p10 = scmp.eq.s32.totalorder %s824_s19, 1 }
  0x14   : > { %s1652_s24 = scalar_select %p1195_p8, 1, 0 }
  0x15   : > { %s1653_s25 = scalar_select %p1199_p9, 1, 0 }
  0x16   : > { %s1204_s26 = scalar_select %p50_p7, %s1097_s14, %s52_s21  }
  0x17   : > { %p1206_p11 = por %p175_p10, %p65_p3  ;;  %p874_p13 = scmp.lt.s32.totalorder %s1109_s17, 2 }
  0x18   : > { %1654 = sst [smem:[#allocation15_spill]] %s1204_s26  ;;  %s1213_s28 = sand.u32 1, %s1097_s14  }
  0x19   : > { %s1655_s27 = scalar_select %p1206_p11, 1, 0 }
  0x1a   : > { %s1216_s29 = sshll.u32 %s1105_s16, 10  ;;  %p1220_p0 = pnand %p874_p13, %p1187_p4 }
  0x1b   : > { %s221_s4 = sand.u32 1, %s1109_s17   ;;  %s830_s5 = sshll.u32 %s1213_s28, 5 }
  0x1c   : > { %s1657_s1 = sld [smem:[#allocation16_spill]]  ;;  %s225_s9 = scalar_lea.vmem [#allocation5], %s830_s5 }
  0x1d   : > { %s240_s10 = sshll.u32 %s225_s9, 4  ;;  %s1236_s11 = scalar_lea.sflag [#allocation6], %s221_s4  ;;  %s1234_s10 = int_to_ptr.vmem [resolvable:$true] %s240_s10 }
  0x1e   : > { %p1242_p2 = pneg %p1220_p0 }
  0x22   : > { %s1230_s8 = scalar_lea.hbm %s1657_s1, %s1216_s29  ;;  %s938_s6 = scalar_lea.hbm %s1657_s1, 2048 }
  0x23   : > { %s933_s19 = scalar_lea.hbm %s1230_s8, 512  ;;  %p939_p5 = scmp.lt.u32.totalorder %s1230_s8, %s1657_s1 }
  0x24   : > { %p934_p1 = scmp.ne.s32.totalorder %s1230_s8, %s933_s19  ;;  %p940_p6 = scmp.lt.u32.totalorder %s938_s6, %s933_s19 }
  0x25   : > { %p942_p10 = scmp.lt.u32.totalorder %s933_s19, %s1230_s8 }
  0x26   : > { %p936_p3 = pnand %p1242_p2, %p934_p1  ;;  %p941_p7 = por %p940_p6, %p939_p5 }
  0x28   : > { %p937_p4 = pneg %p936_p3  ;;  %p943_p13 = por %p942_p10, %p941_p7 }
  0x2a   : > { %p944_p12 = pnand %p943_p13, %p937_p4 }
  0x2c   : > { %947 = shalt.err (!%p944_p12)
}
  0x2d   : > { %s948_s4 = scalar_lea.vmem %s1234_s10, 512  ;;  %s1111_s22 = smov [#allocation5]  }
  0x2e   : > { %p949_p1 = scmp.ne.s32.totalorder %s1234_s10, %s948_s4  ;;  %s953_s23 = sshll.u32 %s1111_s22, 4  ;;  %s954_s23 = int_to_ptr.vmem [resolvable:$false] %s953_s23 }
  0x2f   : > { %s955_s7 = scalar_lea.vmem %s954_s23, 1024  ;;  %p956_p9 = scmp.lt.s32.totalorder %s1234_s10, %s954_s23 }
  0x30   : > { %p951_p3 = pnand %p949_p1, %p1242_p2  ;;  %p957_p8 = scmp.lt.s32.totalorder %s955_s7, %s948_s4 }
  0x32   : > { %p952_p11 = pneg %p951_p3  ;;  %p958_p5 = por %p957_p8, %p956_p9 }
  0x34   : > { %p959_p6 = pnand %p958_p5, %p952_p11 }
  0x36   : > { %962 = shalt.err (!%p959_p6)
}
  0x37   : > { %s1641_s19 = smov 256   ;;  %s1642_s6 = smov 128  }
  0x38   : > { %s1644_s9 = smov 8   ;;  %s254_s4 = scalar_lea.vmem [#allocation7], %s830_s5 }
  0x39   : > { %866 = dma.hbm_to_vmem [thread:$0]  (!%p1220_p0), %s1230_s8, 512, %s1234_s10, %s1236_s11, %s1641_s19, %s1642_s6, %s1644_s9  }
  0x3a   : > { %s269_s22 = sshll.u32 %s254_s4, 4  ;;  %p836_p8 = scmp.ge.s32.totalorder %s1109_s17, 1  ;;  %s1272_s22 = int_to_ptr.vmem [resolvable:$true] %s269_s22 }
  0x3b   : > { %p277_p9 = scmp.lt.s32.totalorder %s1109_s17, 3  ;;  %s827_s7 = sshll.u32 %s1213_s28, 6 }
  0x3c   : > { %s1284_s16 = scalar_lea.hbm %s1633_s0, %s1216_s29  ;;  %s849_s5 = sadd.s32 128, %s1216_s29 }
  0x3d   : > { %p1275_p11 = pnand %p836_p8, %p277_p9  ;;  %s199_s8 = scalar_lea.vmem [#allocation2], %s827_s7 }
  0x3e   : > { %s211_s10 = sshll.u32 %s199_s8, 4  ;;  %s1290_s6 = scalar_lea.hbm %s1635_s2, %s849_s5  ;;  %s1292_s10 = int_to_ptr.vmem [resolvable:$true] %s211_s10 }
  0x3f   : > { %s1659_s23 = scalar_select %p1275_p11, 1, 0 }
  0x40   : > { %s196_s9 = scalar_lea.sflag [#allocation3], %s1213_s28  ;;  %s963_s26 = scalar_lea.hbm %s1284_s16, 1024 }
  0x41   : > { %p964_p12 = scmp.ne.s32.totalorder %s1284_s16, %s963_s26  ;;  %s968_s14 = scalar_lea.hbm %s1633_s0, 2048 }
  0x42   : > { %p969_p10 = scmp.lt.u32.totalorder %s1284_s16, %s1633_s0  ;;  %p970_p13 = scmp.lt.u32.totalorder %s968_s14, %s963_s26 }
  0x43   : > { %p966_p4 = pnand %p964_p12, %p1242_p2  ;;  %p972_p3 = scmp.lt.u32.totalorder %s963_s26, %s1284_s16 }
  0x44   : > { %p971_p1 = por %p970_p13, %p969_p10 }
  0x45   : > { %p967_p7 = pneg %p966_p4 }
  0x46   : > { %p973_p5 = por %p972_p3, %p971_p1 }
  0x48   : > { %p974_p6 = pnand %p973_p5, %p967_p7 }
  0x4a   : > { %977 = shalt.err (!%p974_p6)
}
  0x4b   : > { %s978_s19 = scalar_lea.vmem %s1292_s10, 1024  ;;  %s1115_s5 = smov [#allocation2]  }
  0x4c   : > { %p979_p8 = scmp.ne.s32.totalorder %s1292_s10, %s978_s19  ;;  %s983_s8 = sshll.u32 %s1115_s5, 4  ;;  %s984_s8 = int_to_ptr.vmem [resolvable:$false] %s983_s8 }
  0x4d   : > { %s985_s4 = scalar_lea.vmem %s984_s8, 2048  ;;  %p986_p4 = scmp.lt.s32.totalorder %s1292_s10, %s984_s8 }
  0x4e   : > { %p981_p9 = pnand %p979_p8, %p1242_p2  ;;  %p987_p11 = scmp.lt.s32.totalorder %s985_s4, %s978_s19 }
  0x50   : > { %p982_p12 = pneg %p981_p9  ;;  %p988_p10 = por %p987_p11, %p986_p4 }
  0x52   : > { %p989_p13 = pnand %p988_p10, %p982_p12 }
  0x54   : > { %992 = shalt.err (!%p989_p13)
}
  0x55   : > { %s1660_s14 = smov 8   ;;  %s1661_s26 = smov 128  }
  0x56   : > { %863 = dma.hbm_to_vmem [thread:$0]  (!%p1220_p0), %s1284_s16, 1024, %s1292_s10, %s196_s9, %s1661_s26, %s1661_s26, %s1660_s14  }
  0x57   : > { %s993_s1 = scalar_lea.hbm %s1290_s6, 512  ;;  %s998_s7 = scalar_lea.hbm %s1635_s2, 2048 }
  0x58   : > { %p994_p7 = scmp.ne.s32.totalorder %s1290_s6, %s993_s1  ;;  %p999_p3 = scmp.lt.u32.totalorder %s1290_s6, %s1635_s2 }
  0x59   : > { %p1000_p5 = scmp.lt.u32.totalorder %s998_s7, %s993_s1  ;;  %p1002_p8 = scmp.lt.u32.totalorder %s993_s1, %s1290_s6 }
  0x5a   : > { %p996_p11 = pnand %p994_p7, %p1242_p2 }
  0x5b   : > { %p1001_p6 = por %p1000_p5, %p999_p3 }
  0x5c   : > { %p997_p1 = pneg %p996_p11 }
  0x5d   : > { %p1003_p9 = por %p1002_p8, %p1001_p6 }
  0x5f   : > { %p1004_p12 = pnand %p1003_p9, %p997_p1 }
  0x61   : > { %1007 = shalt.err (!%p1004_p12)
}
  0x62   : > { %s1008_s16 = scalar_lea.vmem %s1272_s22, 512  ;;  %s1116_s28 = smov [#allocation7]  }
  0x63   : > { %p1009_p4 = scmp.ne.s32.totalorder %s1272_s22, %s1008_s16  ;;  %s1013_s9 = sshll.u32 %s1116_s28, 4  ;;  %s1014_s9 = int_to_ptr.vmem [resolvable:$false] %s1013_s9 }
  0x64   : > { %s1015_s10 = scalar_lea.vmem %s1014_s9, 1024  ;;  %p1016_p7 = scmp.lt.s32.totalorder %s1272_s22, %s1014_s9 }
  0x65   : > { %p1011_p10 = pnand %p1009_p4, %p1242_p2  ;;  %p1017_p11 = scmp.lt.s32.totalorder %s1015_s10, %s1008_s16 }
  0x67   : > { %p1012_p13 = pneg %p1011_p10  ;;  %p1018_p3 = por %p1017_p11, %p1016_p7 }
  0x69   : > { %p1019_p5 = pnand %p1018_p3, %p1012_p13 }
  0x6b   : > { %1022 = shalt.err (!%p1019_p5)
}
  0x6c   : > { %s1662_s8 = smov 256   ;;  %p1663_p2 = scmp.ne.s32.totalorder %s1659_s23, 0 }
  0x6d   : > { %869 = dma.hbm_to_vmem [thread:$0]  (!%p1220_p0), %s1290_s6, 512, %s1272_s22, %s1236_s11, %s1662_s8, %s1661_s26, %s1660_s14  }
  0x6e   : > { %281 = sbr.rel (%p1663_p2) target bundleno = 535 (0x217), region = 32  ;;  %s1349_s21 = sand.u32 (!%p1663_p2), 1, %s1093_s13  }
  0x6f   : > { %s837_s4 = sshll.u32 (!%p1663_p2), %s1349_s21, 6  ;;  %s284_s1 = scalar_lea.sflag (!%p1663_p2), [#allocation3], %s1349_s21 }
  0x70   : > { %s1355_s30 = scalar_lea.vmem (!%p1663_p2), [#allocation2], %s837_s4  ;;  %p1664_p1 = scmp.ne.s32.totalorder (!%p1663_p2), %s1652_s24, 0 }
  0x75   : > { %1076 = dma.done.wait (%p1664_p1), %s284_s1, 1024  }
  0x76   : > { %1078 = vsyncadd (%p1664_p1), %s284_s1, 4294966272  ;;  %s292_s11 = sand.u32 1, %s1175_s18  }
  0x77   : > { %s293_s6 = scalar_lea.sflag [#allocation6], %s292_s11 }
  0x78   : > { %1080 = dma.done.wait (%p1664_p1), %s293_s6, 1024  }
  0x79   : > { %1082 = vsyncadd (%p1664_p1), %s293_s6, 4294966272  ;;  %v384_v0 = vlaneseq  ;;  %v352_v5 = vld [vmem:[%s1355_s30] sm:$0xff]  ;;  %v353_v6 = vld [vmem:[%s1355_s30 + $0x8] sm:$0xff]  ;;  %v1117_v7 = vmov 0.0   ;;  %s1118_s18 = smov 16   ;;  %vm500_vm4 = vcmask 1047680  }
  0x7a   : > { %v354_v9 = vld [vmem:[%s1355_s30 + $0x10] sm:$0xff]  ;;  %v389_v11 = vrot.slane %v352_v5, 1  ;;  %v393_v12 = vrot.slane %v353_v6, 1  ;;  %v436_v13 = vrot.slane %v352_v5, 7  ;;  %v440_v14 = vrot.slane %v353_v6, 7  ;;  %v355_v15 = vld [vmem:[%s1355_s30 + $0x18] sm:$0xff] }
  0x7b   : > { %v1367_v1 = vshrl.u32 %v384_v0, 7  ;;  %v356_v16 = vld [vmem:[%s1355_s30 + $0x20] sm:$0xff]  ;;  %v390_v17 = vrot.slane %v354_v9, 1  ;;  %v394_v18 = vrot.slane %v355_v15, 1  ;;  %v437_v19 = vrot.slane %v354_v9, 7  ;;  %v357_v21 = vld [vmem:[%s1355_s30 + $0x28] sm:$0xff] }
  0x7c   : > { %v441_v20 = vrot.slane %v355_v15, 7  ;;  %v391_v24 = vrot.slane %v356_v16, 1  ;;  %v395_v25 = vrot.slane %v357_v21, 1  ;;  %v438_v33 = vrot.slane %v356_v16, 7  ;;  %v358_v38 = vld [vmem:[%s1355_s30 + $0x30] sm:$0xff]  ;;  %v359_v39 = vld [vmem:[%s1355_s30 + $0x38] sm:$0xff] }
  0x7d   : > { %v459_v2 = vsub.s32 7, %v1367_v1  ;;  %v1371_v3 = vadd.s32 8, %v1367_v1  ;;  %v412_v4 = vsub.s32 0, %v1367_v1  ;;  %vm397_vm0 = vcmp.lt.s32.totalorder %v1367_v1, 7  ;;  %s1119_s24 = smov 127   ;;  %s1120_s22 = smov 113  }
  0x7e   : > { %vm434_vm1 = vcmp.gt.s32.totalorder %v1367_v1, 0  ;;  %vm444_vm2 = vcmp.lt.s32.totalorder %v1367_v1, 1  ;;  %v398_v22 = vsel %vm397_vm0, %v389_v11, %v393_v12  ;;  %v399_v28 = vsel %vm397_vm0, %v390_v17, %v394_v18  ;;  %s1533_s23 = scalar_lea.vmem [#allocation8], %s837_s4  ;;  %s850_s14 = sshll.u32 %s1101_s15, 10 }
  0x7f   : > { %v1379_v8 = vrot.slane %v1117_v7, %v459_v2  ;;  %vm388_vm3 = vcmp.lt.s32.totalorder %v1371_v3, 15  ;;  %v413_v10 = vrot.slane %v1117_v7, %v412_v4  ;;  %v449_v23 = vsel %vm444_vm2, %v440_v14, %v436_v13  ;;  %s678_s26 = sshll.u32 %s1533_s23, 4  ;;  %s1580_s7 = scalar_lea.hbm %s1636_s3, %s850_s14  ;;  %s1582_s26 = int_to_ptr.vmem [resolvable:$true] %s678_s26 }
  0x80   : > { %v481_v27 = vadd.f32 %v398_v22, %v352_v5  ;;  %v450_v29 = vsel %vm444_vm2, %v441_v20, %v437_v19  ;;  %v483_v31 = vadd.f32 %v399_v28, %v354_v9  ;;  %v400_v32 = vsel %vm397_vm0, %v391_v24, %v395_v25  ;;  %s660_s15 = scalar_lea.sflag [#allocation4], %s1349_s21  ;;  %s1023_s19 = scalar_lea.vmem %s1582_s26, 1024 }
  0x81   : > { %v473_v26 = vsel %vm434_vm1, %v449_v23, %v1379_v8  ;;  %v475_v30 = vsel %vm434_vm1, %v450_v29, %v1379_v8  ;;  %v442_v35 = vrot.slane %v357_v21, 7  ;;  %v485_v36 = vadd.f32 %v400_v32, %v356_v16  ;;  %p1024_p0 = scmp.ne.s32.totalorder %s1582_s26, %s1023_s19  ;;  %p1665_p6 = scmp.ne.s32.totalorder %s1653_s25, 0 }
  0x82   : > { %v1402_v34 = vadd.f32 %v481_v27, %v473_v26  ;;  %v402_v37 = vsel %vm397_vm0, %v393_v12, %v389_v11  ;;  %v1408_v40 = vadd.f32 %v483_v31, %v475_v30  ;;  %v445_v42 = vsel %vm444_vm2, %v436_v13, %v440_v14  ;;  %s1121_s5 = smov [#allocation8]  }
  0x83   : > { %v427_v41 = vsel %vm388_vm3, %v402_v37, %v413_v10  ;;  %v403_v43 = vsel %vm397_vm0, %v394_v18, %v390_v17  ;;  %v451_v44 = vsel %vm444_vm2, %v442_v35, %v438_v33  ;;  %v446_v47 = vsel %vm444_vm2, %v437_v19, %v441_v20  ;;  %p1025_p8 = pnand %p1024_p0, %p1665_p6  ;;  %s1027_s16 = sshll.u32 %s1121_s5, 4  ;;  %s1028_s16 = int_to_ptr.vmem [resolvable:$false] %s1027_s16 }
  0x84   : > { %501 = vrot.lane.b32.xlu0 %v1402_v34, %s1118_s18  ;;  %v482_v45 = vadd.f32 %v427_v41, %v353_v6  ;;  %v429_v46 = vsel %vm388_vm3, %v403_v43, %v413_v10  ;;  %507 = vrot.lane.b32.xlu1 %v1408_v40, %s1118_s18  ;;  %v477_v48 = vsel %vm434_vm1, %v451_v44, %v1379_v8  ;;  %v392_v50 = vrot.slane %v358_v38, 1  ;;  %s1029_s28 = scalar_lea.vmem %s1028_s16, 2048  ;;  %p1030_p12 = scmp.lt.s32.totalorder %s1582_s26, %s1028_s16 }
  0x85   : > { %v484_v49 = vadd.f32 %v429_v46, %v355_v15  ;;  %v396_v51 = vrot.slane %v359_v39, 1  ;;  %v1429_v52 = vadd.f32 %v485_v36, %v477_v48  ;;  %v439_v54 = vrot.slane %v358_v38, 7  ;;  %p1026_p9 = pneg %p1025_p8  ;;  %p1031_p4 = scmp.lt.s32.totalorder %s1029_s28, %s1023_s19 }
  0x86   : > { %v1431_v53 = vadd.f32 %v482_v45, %v445_v42  ;;  %v443_v55 = vrot.slane %v359_v39, 7  ;;  %v404_v58 = vsel %vm397_vm0, %v395_v25, %v391_v24  ;;  %v447_v59 = vsel %vm444_vm2, %v438_v33, %v442_v35 }
  0x87   : > { %v1433_v56 = vadd.f32 %v484_v49, %v446_v47  ;;  %v401_v57 = vsel %vm397_vm0, %v392_v50, %v396_v51  ;;  %v431_v62 = vsel %vm388_vm3, %v404_v58, %v413_v10  ;;  %v405_v63 = vsel %vm397_vm0, %v396_v51, %v392_v50  ;;  %p1032_p10 = por %p1031_p4, %p1030_p12 }
  0x88   : > { %513 = vrot.lane.b32.xlu0 %v1429_v52, %s1118_s18  ;;  %v452_v60 = vsel %vm444_vm2, %v443_v55, %v439_v54  ;;  %v487_v61 = vadd.f32 %v401_v57, %v358_v38  ;;  %v486_v4 = vadd.f32 %v431_v62, %v357_v21  ;;  %v433_v5 = vsel %vm388_vm3, %v405_v63, %v413_v10 }
  0x89   : > { %510 = vrot.lane.b32.xlu1 %v1433_v56, %s1118_s18  ;;  %v479_v2 = vsel %vm434_vm1, %v452_v60, %v1379_v8  ;;  %v448_v6 = vsel %vm444_vm2, %v439_v54, %v443_v55  ;;  %v488_v7 = vadd.f32 %v433_v5, %v359_v39  ;;  %v1513_v45 = vand.u32 127, %v384_v0  ;;  %p1033_p13 = pnand %p1032_p10, %p1026_p9 }
  0x8a   : > { %v1458_v9 = vadd.f32 %v486_v4, %v447_v59  ;;  %v1462_v11 = vadd.f32 %v487_v61, %v479_v2  ;;  %vm650_vm7 = vcmask 130048  }
  0x8b   : > { %v1466_v12 = vadd.f32 %v488_v7, %v448_v6  ;;  %vm499_vm5 = vcmp.lt.s32.totalorder %v1513_v45, 15  ;;  %vm591_vm6 = vcmp.gt.s32.totalorder %v1513_v45, 0 }
  0x8c   : > { %504 = vrot.lane.b32.xlu0 %v1431_v53, %s1118_s18 }
  0x8d   : > { %516 = vrot.lane.b32.xlu1 %v1458_v9, %s1118_s18 }
  0x90   : > { %519 = vrot.lane.b32.xlu0 %v1462_v11, %s1118_s18 }
  0x91   : > { %522 = vrot.lane.b32.xlu1 %v1466_v12, %s1118_s18 }
  0xf6   : > { %v502_v1 = vpop.permute.xlu0 %501  ;;  %v508_v8 = vpop.permute.xlu1 %507 }
  0xf7   : > { %v503_v3 = vsel %vm500_vm4, %v502_v1, %v1402_v34  ;;  %v509_v10 = vsel %vm500_vm4, %v508_v8, %v1408_v40 }
  0xf8   : > { %525 = vrot.lane.b32.xlu0 %v503_v3, %s1118_s18 }
  0xfa   : > { %v514_v13 = vpop.permute.xlu0 %513 }
  0xfb   : > { %v511_v14 = vpop.permute.xlu1 %510  ;;  %v515_v16 = vsel %vm500_vm4, %v514_v13, %v1429_v52 }
  0xfc   : > { %529 = vrot.lane.b32.xlu0 %v509_v10, %s1118_s18  ;;  %v512_v19 = vsel %vm500_vm4, %v511_v14, %v1433_v56 }
  0xfe   : > { %v505_v15 = vpop.permute.xlu0 %504 }
  0xff   : > { %v506_v17 = vsel %vm500_vm4, %v505_v15, %v1431_v53  ;;  %v517_v18 = vpop.permute.xlu1 %516 }
 0x100   : > { %533 = vrot.lane.b32.xlu0 %v515_v16, %s1118_s18  ;;  %527 = vrot.lane.b32.xlu1 %v506_v17, %s1118_s18  ;;  %v518_v22 = vsel %vm500_vm4, %v517_v18, %v1458_v9 }
 0x102   : > { %v520_v20 = vpop.permute.xlu0 %519 }
 0x103   : > { %v521_v21 = vsel %vm500_vm4, %v520_v20, %v1462_v11  ;;  %v523_v23 = vpop.permute.xlu1 %522 }
 0x104   : > { %531 = vrot.lane.b32.xlu1 %v512_v19, %s1118_s18  ;;  %537 = vrot.lane.b32.xlu0 %v521_v21, %s1118_s18  ;;  %v524_v24 = vsel %vm500_vm4, %v523_v23, %v1466_v12 }
 0x108   : > { %535 = vrot.lane.b32.xlu1 %v518_v22, %s1118_s18 }
 0x10c   : > { %539 = vrot.lane.b32.xlu1 %v524_v24, %s1118_s18 }
 0x16a   : > { %v526_v25 = vpop.permute.xlu0 %525 }
 0x16b   : > { %v541_v26 = vsel %vm500_vm4, %v526_v25, %v1402_v34 }
 0x16c   : > { %559 = vrot.lane.b32.xlu0 %v541_v26, %s1119_s24 }
 0x16e   : > { %v530_v27 = vpop.permute.xlu0 %529 }
 0x16f   : > { %v543_v28 = vsel %vm500_vm4, %v530_v27, %v1408_v40 }
 0x170   : > { %563 = vrot.lane.b32.xlu0 %v543_v28, %s1119_s24 }
 0x172   : > { %v528_v29 = vpop.permute.xlu1 %527  ;;  %v534_v30 = vpop.permute.xlu0 %533 }
 0x173   : > { %v542_v31 = vsel %vm500_vm4, %v528_v29, %v1431_v53  ;;  %v545_v32 = vsel %vm500_vm4, %v534_v30, %v1429_v52 }
 0x174   : > { %561 = vrot.lane.b32.xlu1 %v542_v31, %s1119_s24  ;;  %567 = vrot.lane.b32.xlu0 %v545_v32, %s1119_s24 }
 0x176   : > { %v532_v33 = vpop.permute.xlu1 %531  ;;  %v538_v35 = vpop.permute.xlu0 %537 }
 0x177   : > { %v544_v36 = vsel %vm500_vm4, %v532_v33, %v1433_v56  ;;  %v547_v37 = vsel %vm500_vm4, %v538_v35, %v1462_v11 }
 0x178   : > { %565 = vrot.lane.b32.xlu1 %v544_v36, %s1119_s24  ;;  %571 = vrot.lane.b32.xlu0 %v547_v37, %s1119_s24 }
 0x17a   : > { %v536_v38 = vpop.permute.xlu1 %535 }
 0x17b   : > { %v546_v39 = vsel %vm500_vm4, %v536_v38, %v1458_v9 }
 0x17c   : > { %569 = vrot.lane.b32.xlu1 %v546_v39, %s1119_s24  ;;  %594 = vrot.lane.b32.xlu0 %v541_v26, %s1120_s22 }
 0x17e   : > { %v540_v41 = vpop.permute.xlu1 %539 }
 0x17f   : > { %v548_v42 = vsel %vm500_vm4, %v540_v41, %v1466_v12 }
 0x180   : > { %573 = vrot.lane.b32.xlu1 %v548_v42, %s1119_s24  ;;  %598 = vrot.lane.b32.xlu0 %v543_v28, %s1120_s22 }
 0x184   : > { %596 = vrot.lane.b32.xlu1 %v542_v31, %s1120_s22  ;;  %602 = vrot.lane.b32.xlu0 %v545_v32, %s1120_s22 }
 0x188   : > { %600 = vrot.lane.b32.xlu1 %v544_v36, %s1120_s22  ;;  %606 = vrot.lane.b32.xlu0 %v547_v37, %s1120_s22 }
 0x18c   : > { %604 = vrot.lane.b32.xlu1 %v546_v39, %s1120_s22 }
 0x190   : > { %608 = vrot.lane.b32.xlu1 %v548_v42, %s1120_s22 }
 0x1de   : > { %v560_v43 = vpop.permute.xlu0 %559 }
 0x1df   : > { %v583_v50 = vsel %vm499_vm5, %v560_v43, 0.0 }
 0x1e0   : > { %v626_v51 = vadd.f32 %v583_v50, %v1402_v34 }
 0x1e2   : > { %v564_v44 = vpop.permute.xlu0 %563 }
 0x1e3   : > { %v585_v0 = vsel %vm499_vm5, %v564_v44, 0.0 }
 0x1e4   : > { %v628_v59 = vadd.f32 %v585_v0, %v1408_v40 }
 0x1e6   : > { %v562_v46 = vpop.permute.xlu1 %561  ;;  %v568_v47 = vpop.permute.xlu0 %567 }
 0x1e7   : > { %v584_v63 = vsel %vm499_vm5, %v562_v46, 0.0  ;;  %v587_v34 = vsel %vm499_vm5, %v568_v47, 0.0 }
 0x1e8   : > { %v627_v4 = vadd.f32 %v584_v63, %v1431_v53  ;;  %v630_v5 = vadd.f32 %v587_v34, %v1429_v52 }
 0x1ea   : > { %v566_v48 = vpop.permute.xlu1 %565  ;;  %v572_v49 = vpop.permute.xlu0 %571 }
 0x1eb   : > { %v586_v3 = vsel %vm499_vm5, %v566_v48, 0.0  ;;  %v589_v8 = vsel %vm499_vm5, %v572_v49, 0.0 }
 0x1ec   : > { %v629_v14 = vadd.f32 %v586_v3, %v1433_v56  ;;  %v632_v15 = vadd.f32 %v589_v8, %v1462_v11 }
 0x1ee   : > { %v570_v54 = vpop.permute.xlu1 %569  ;;  %v595_v55 = vpop.permute.xlu0 %594 }
 0x1ef   : > { %v618_v57 = vsel %vm591_vm6, %v595_v55, 0.0  ;;  %v588_v20 = vsel %vm499_vm5, %v570_v54, 0.0 }
 0x1f0   : > { %v634_v58 = vadd.f32 %v626_v51, %v618_v57  ;;  %v631_v23 = vadd.f32 %v588_v20, %v1458_v9 }
 0x1f2   : > { %v642_v60 = vmul.f32 0.11111111, %v634_v58  ;;  %v574_v61 = vpop.permute.xlu1 %573  ;;  %v599_v62 = vpop.permute.xlu0 %598 }
 0x1f3   : > { %v620_v2 = vsel %vm591_vm6, %v599_v62, 0.0  ;;  %v590_v27 = vsel %vm499_vm5, %v574_v61, 0.0 }
 0x1f4   : > { %651 = vst.msk [vmem:[%s1533_s23] sm:$0xff] %vm650_vm7, %v642_v60  ;;  %v636_v40 = vadd.f32 %v628_v59, %v620_v2  ;;  %v633_v30 = vadd.f32 %v590_v27, %v1466_v12 }
 0x1f6   : > { %v644_v6 = vmul.f32 0.11111111, %v636_v40  ;;  %v597_v7 = vpop.permute.xlu1 %596  ;;  %v603_v1 = vpop.permute.xlu0 %602 }
 0x1f7   : > { %v619_v10 = vsel %vm591_vm6, %v597_v7, 0.0  ;;  %v622_v13 = vsel %vm591_vm6, %v603_v1, 0.0 }
 0x1f8   : > { %653 = vst.msk [vmem:[%s1533_s23 + $0x10] sm:$0xff] %vm650_vm7, %v644_v6  ;;  %v635_v52 = vadd.f32 %v627_v4, %v619_v10  ;;  %v638_v53 = vadd.f32 %v630_v5, %v622_v13 }
 0x1fa   : > { %v643_v16 = vmul.f32 0.11111111, %v635_v52  ;;  %v646_v17 = vmul.f32 0.11111111, %v638_v53  ;;  %v601_v18 = vpop.permute.xlu1 %600  ;;  %v607_v19 = vpop.permute.xlu0 %606 }
 0x1fb   : > { %v621_v21 = vsel %vm591_vm6, %v601_v18, 0.0  ;;  %v624_v22 = vsel %vm591_vm6, %v607_v19, 0.0 }
 0x1fc   : > { %652 = vst.msk [vmem:[%s1533_s23 + $0x8] sm:$0xff] %vm650_vm7, %v643_v16  ;;  %655 = vst.msk [vmem:[%s1533_s23 + $0x20] sm:$0xff] %vm650_vm7, %v646_v17  ;;  %v637_v56 = vadd.f32 %v629_v14, %v621_v21  ;;  %v640_v11 = vadd.f32 %v632_v15, %v624_v22 }
 0x1fe   : > { %v645_v24 = vmul.f32 0.11111111, %v637_v56  ;;  %v648_v25 = vmul.f32 0.11111111, %v640_v11  ;;  %v605_v26 = vpop.permute.xlu1 %604 }
 0x1ff   : > { %v623_v28 = vsel %vm591_vm6, %v605_v26, 0.0 }
 0x200   : > { %654 = vst.msk [vmem:[%s1533_s23 + $0x18] sm:$0xff] %vm650_vm7, %v645_v24  ;;  %657 = vst.msk [vmem:[%s1533_s23 + $0x30] sm:$0xff] %vm650_vm7, %v648_v25  ;;  %v639_v29 = vadd.f32 %v631_v23, %v623_v28 }
 0x202   : > { %v647_v9 = vmul.f32 0.11111111, %v639_v29  ;;  %v609_v31 = vpop.permute.xlu1 %608 }
 0x203   : > { %v625_v32 = vsel %vm591_vm6, %v609_v31, 0.0 }
 0x204   : > { %656 = vst.msk [vmem:[%s1533_s23 + $0x28] sm:$0xff] %vm650_vm7, %v647_v9  ;;  %v641_v33 = vadd.f32 %v633_v30, %v625_v32 }
 0x206   : > { %v649_v12 = vmul.f32 0.11111111, %v641_v33 }
 0x208   : > { %658 = vst.msk [vmem:[%s1533_s23 + $0x38] sm:$0xff] %vm650_vm7, %v649_v12 }
 0x209   : > { %1036 = shalt.err (!%p1033_p13)
}
 0x20a   : > { %s1037_s9 = scalar_lea.hbm %s1580_s7, 1024  ;;  %s1041_s4 = scalar_lea.hbm %s1636_s3, 2048 }
 0x20b   : > { %p1038_p7 = scmp.ne.s32.totalorder %s1580_s7, %s1037_s9  ;;  %p1042_p5 = scmp.lt.u32.totalorder %s1580_s7, %s1636_s3 }
 0x20c   : > { %p1043_p2 = scmp.lt.u32.totalorder %s1041_s4, %s1037_s9  ;;  %p1045_p0 = scmp.lt.u32.totalorder %s1037_s9, %s1580_s7 }
 0x20d   : > { %p1039_p11 = pnand %p1038_p7, %p1665_p6 }
 0x20e   : > { %p1044_p1 = por %p1043_p2, %p1042_p5 }
 0x20f   : > { %p1040_p3 = pneg %p1039_p11 }
 0x210   : > { %p1046_p8 = por %p1045_p0, %p1044_p1 }
 0x212   : > { %p1047_p9 = pnand %p1046_p8, %p1040_p3 }
 0x214   : > { %1050 = shalt.err (!%p1047_p9)
}
 0x215   : > { %s1122_s11 = smov 128   ;;  %s1123_s6 = smov 8  }
 0x216   : > { %858 = dma.vmem_to_hbm [thread:$0]  (%p1665_p6), %s1582_s26, 1024, %s1580_s7, %s660_s15, %s1122_s11, %s1122_s11, %s1123_s6  }
 0x217 PF: > { %s693_s18 = sand.u32 1, %s1089_s12   ;;  %p1666_p12 = scmp.ne.s32.totalorder %s1655_s27, 0 }
 0x218   : > { %p1667_p4 = scmp.ge.s32.totalorder %s1109_s17, 2  ;;  %s694_s24 = scalar_lea.sflag [#allocation4], %s693_s18 }
 0x21a   : > { %p871_p10 = pnand %p1667_p4, %p1666_p12 }
 0x21c   : > { %1084 = dma.done.wait (!%p871_p10), %s694_s24, 1024  }
 0x21d   : > { %1086 = vsyncadd (!%p871_p10), %s694_s24, 4294966272  ;;  %s22_s17 = sadd.s32 1, %s1109_s17   ;;  %s1668_s22 = sld [smem:[#allocation12_spill]] }
 0x21e   : > { %p19_p13 = scmp.ge.s32.totalorder %s22_s17, 4   ;;  %s1669_s14 = sld [smem:[#allocation15_spill]] }
 0x21f   : > { %s1670_s15 = sld [smem:[#allocation13_spill]]  ;;  %s1671_s16 = sld [smem:[#allocation14_spill]] }
 0x220   : > { %s1672_s12 = smov %s1093_s13  ;;  %21 = sbr.rel (!%p19_p13) target bundleno = 10 (0xa), region = 101 }
 0x223   : > { %s1673_s13 = smov %s1668_s22 }
 0x227   :  { %699 = vsyncpa [#allocation3], 1 }
 0x228   :  { %701 = vsyncpa [#allocation3 + $0x1], 1 }
 0x229   :  { %702 = vsyncpa [#allocation6], 1 }
 0x22a   :  { %704 = vsyncpa [#allocation6 + $0x1], 1 }
 0x22b   :  { %705 = vsyncpa [#allocation4], 1 }
 0x22c   :  { %707 = vsyncpa [#allocation4 + $0x1], 1 }

</bundles_post_ra>
